<compile_context>
chip_gen: v6e
topology: v6e:2x2x1
jax: 0.10.0
libtpu: 0.0.40
codegen_flags: <defaults>
</compile_context>

<pallas_src>
import jax
import jax.numpy as jnp
from jax.experimental import pallas as pl
from jax.experimental.pallas import tpu as pltpu


def _round_up(a, m):
    return (a + m - 1) // m * m


def _vmem_capacity_bytes():
    try:
        return int(pltpu.get_tpu_info().vmem_capacity_bytes)
    except Exception:
        return 64 * 1024 * 1024  # conservative fallback (v7x per-core VMEM)


def _choose_tiles(B, S, D, itemsize, budget):
    """Jointly pick (TB, TS, s_pad).  s_pad > 0 only on the rare slow path."""
    row_bytes = S * D * itemsize  # one batch row, full sequence

    # --- batch tile --------------------------------------------------------
    # TB is a multiple of 8 (block-layout legal even when it does not divide
    # B; the ragged tail only feeds output rows that are dropped on write
    # back) or the full batch when B <= 8.  Keep >= 2 batch tiles when
    # possible so the v7x megacore has parallel work.
    if B <= 8:
        TB = B
    else:
        TB = 8
        while TB * 2 * row_bytes <= budget and pl.cdiv(B, TB * 2) >= 2:
            TB *= 2

    # --- sequence tile -----------------------------------------------------
    # Prefer the whole sequence in one block (single S step, biggest DMAs);
    # otherwise the largest multiple-of-128 divisor of S that fits the budget
    # (multiple of 128 keeps the (TB, TS) mask block lane-legal; divisor of S
    # avoids padding / re-streaming x through HBM).
    if TB * row_bytes <= budget:
        return TB, S, 0
    max_ts = max(128, (budget // (TB * D * itemsize)) // 128 * 128)
    ts = max_ts
    while ts >= 128:
        if S % ts == 0:
            return TB, ts, 0
        ts -= 128
    # Rare slow path: no multiple-of-128 divisor of S fits -> pad S.
    ts = max_ts
    return TB, ts, _round_up(S, ts) - S


def _generator_kernel(x_ref, m_ref, w_ref, out_ref, acc_ref):
    # x_ref:   (TB, TS, D)     activation tile (native dtype)
    # m_ref:   (TB, TS)        float 0/1 mask tile
    # w_ref:   (D, N_OUT)      resident projection weight
    # out_ref: (1, TB, N_OUT)  partial projection for this (split, batch tile)
    # acc_ref: (TB, D) f32     running masked sum over this split's S tiles
    j = pl.program_id(2)

    @pl.when(j == 0)
    def _init():
        acc_ref[...] = jnp.zeros_like(acc_ref)

    x = x_ref[...]
    m = m_ref[...].astype(x.dtype)  # 0/1 mask: exact in bf16 too
    # NOTE: the (TB,TS)->(TB,TS,D) mask broadcast may cost an XLU relayout;
    # the kernel stays DMA-bound so it is hidden (perf review: only switch to
    # an MXU contraction if a per-tile vxpose shows up in the bundle dump).
    acc_ref[...] += jnp.sum(x * m[:, :, None], axis=1, dtype=jnp.float32)

    @pl.when(j == pl.num_programs(2) - 1)
    def _finalize():
        # Project the un-normalized masked sum; the mask-count divide and the
        # bias are applied in the wrapper (they commute with the Linear and
        # with the cross-core partial-sum reduction).
        out_ref[0] = jnp.dot(acc_ref[...], w_ref[...].astype(jnp.float32),
                             preferred_element_type=jnp.float32)


def generator_forward(x, mask, w, b):
    """x: (B, S, D), mask: (B, S), w: (D, N_OUT), b: (N_OUT,) -> (B, N_OUT) f32."""
    B, S, D = x.shape
    n_out = w.shape[1]
    itemsize = jnp.dtype(x.dtype).itemsize

    vmem_cap = _vmem_capacity_bytes()
    budget = max(1 << 20, vmem_cap // 16)  # per x buffer: ~8 MiB v5e/v6e, ~4 MiB v7x
    TB, TS, s_pad = _choose_tiles(B, S, D, itemsize, budget)

    mask_f = mask.astype(jnp.float32)
    msum = jnp.sum(mask_f, axis=1, keepdims=True)  # hoisted mask row-sum (B, 1)

    if s_pad:
        # TODO(synk): slow path (S has no multiple-of-128 divisor that fits
        # VMEM) -- padding re-streams x through HBM once.
        x = jnp.pad(x, ((0, 0), (0, s_pad), (0, 0)))
        mask_f = jnp.pad(mask_f, ((0, 0), (0, s_pad)))
    S_p = S + s_pad

    grid_b = pl.cdiv(B, TB)
    grid_s = S_p // TS
    # Split the S tiles over a leading "parallel" axis when the batch axis has
    # a single tile, so both v7x TensorCores get work (partial projections are
    # summed in the wrapper).  Harmless (sequential) on single-core chips.
    n_split = 2 if (grid_b == 1 and grid_s >= 2 and grid_s % 2 == 0) else 1
    gsh = grid_s // n_split

    x_block_bytes = TB * TS * D * itemsize
    vmem_need = 4 * x_block_bytes + (16 << 20)  # 2x double-buffer + temporaries + slack
    vmem_limit = min(max(vmem_need, 64 << 20), int(0.85 * vmem_cap))

    partial = pl.pallas_call(
        _generator_kernel,
        out_shape=jax.ShapeDtypeStruct((n_split, B, n_out), jnp.float32),
        grid_spec=pltpu.PrefetchScalarGridSpec(
            num_scalar_prefetch=0,
            grid=(n_split, grid_b, gsh),
            in_specs=[
                pl.BlockSpec((TB, TS, D), lambda c, i, j: (i, c * gsh + j, 0)),  # x
                pl.BlockSpec((TB, TS), lambda c, i, j: (i, c * gsh + j)),        # mask
                pl.BlockSpec((D, n_out), lambda c, i, j: (0, 0)),                # W resident
            ],
            out_specs=pl.BlockSpec((1, TB, n_out), lambda c, i, j: (c, i, 0)),
            scratch_shapes=[pltpu.VMEM((TB, D), jnp.float32)],
        ),
        compiler_params=pltpu.CompilerParams(
            dimension_semantics=("parallel", "parallel", "arbitrary"),
            vmem_limit_bytes=vmem_limit,
        ),
    )(x, mask_f, w)

    # Tiny (B, n_out) epilogue: combine core partials, normalize, add bias.
    # NOTE: rows whose mask sums to 0 give NaN, matching the PyTorch module.
    proj_sum = jnp.sum(partial, axis=0)  # (B, n_out)
    return proj_sum / msum + b[None, :].astype(jnp.float32)


def generator_reference(x, mask, w, b):
    m = mask[..., None].astype(jnp.float32)
    pooled = (x.astype(jnp.float32) * m).sum(axis=1) / m.sum(axis=1)
    return pooled @ w + b[None, :]


if __name__ == "__main__":
    key = jax.random.PRNGKey(0)

    def run_case(B, S, D, N_OUT, key, atol, rtol):
        kx, km, kw, kb, key = jax.random.split(key, 5)
        x = jax.random.normal(kx, (B, S, D), dtype=jnp.float32)
        mask = (jax.random.uniform(km, (B, S)) > 0.4).astype(jnp.float32)
        mask = mask.at[:, 0].set(1.0)  # at least one valid token per row
        bound = 1.0 / float(D) ** 0.5
        w = jax.random.uniform(kw, (D, N_OUT), minval=-bound, maxval=bound,
                               dtype=jnp.float32)
        b = jax.random.uniform(kb, (N_OUT,), minval=-bound, maxval=bound,
                               dtype=jnp.float32)
        out = jax.block_until_ready(generator_forward(x, mask, w, b))
        ref = generator_reference(x, mask, w, b)
        assert out.shape == (B, N_OUT)
        assert jnp.allclose(out, ref, atol=atol, rtol=rtol), (out, ref)
        return key

    # 1) module-default small shapes (single grid step).
    key = run_case(2, 8, 32, 1, key, 1e-5, 1e-5)
    # 2) larger shapes: single 8 MiB block on v5e/v6e; S-split across the two
    #    v7x TensorCores (accumulator + partial-projection path).
    key = run_case(8, 512, 512, 4, key, 1e-4, 1e-4)
    # 3) ragged batch (B % TB != 0): exercises the no-padding partial batch tile.
    key = run_case(20, 40, 128, 3, key, 1e-5, 1e-5)

    print("KERNEL_OK")
</pallas_src>

<mosaic_0001>
module attributes {stable_mosaic.version = 11 : i64} {
  func.func @_generator_kernel(%arg0: i32, %arg1: i32, %arg2: i32, %arg3: memref<2x8x32xf32, #tpu.memory_space<vmem>>, %arg4: memref<2x8xf32, #tpu.memory_space<vmem>>, %arg5: memref<32x1xf32, #tpu.memory_space<vmem>>, %arg6: memref<1x2x1xf32, #tpu.memory_space<vmem>>, %arg7: memref<2x32xf32, #tpu.memory_space<vmem>>) attributes {dimension_semantics = [#tpu.dimension_semantics<parallel>, #tpu.dimension_semantics<parallel>, #tpu.dimension_semantics<arbitrary>], iteration_bounds = array<i64: 1, 1, 1>, scalar_prefetch = 0 : i64, scratch_operands = 1 : i64, tpu.core_type = #tpu.core_type<tc>, window_params = [{transform_indices = @transform_0, window_bounds = array<i64: 2, 8, 32>}, {transform_indices = @transform_1, window_bounds = array<i64: 2, 8>}, {pipeline_mode = #tpu.pipeline_mode<synchronous>, transform_indices = @transform_2, window_bounds = array<i64: 32, 1>}, {transform_indices = @transform_3, window_bounds = array<i64: 1, 2, 1>}]} {
    %c0_i32 = arith.constant 0 : i32
    %0 = arith.cmpi eq, %arg2, %c0_i32 : i32
    %1 = arith.extui %0 : i1 to i32
    %c0_i32_0 = arith.constant 0 : i32
    %2 = arith.cmpi ne, %1, %c0_i32_0 : i32
    scf.if %2 {
      %cst_11 = arith.constant 0.000000e+00 : f32
      %15 = vector.broadcast %cst_11 : f32 to vector<2x32xf32>
      %c0_12 = arith.constant 0 : index
      %c0_13 = arith.constant 0 : index
      %16 = vector.load %arg7[%c0_12, %c0_13] : memref<2x32xf32, #tpu.memory_space<vmem>>, vector<2x32xf32>
      tpu.vector_store %arg7[%c0_12, %c0_13], %15 {strides = array<i32>} : memref<2x32xf32, #tpu.memory_space<vmem>>, vector<2x32xf32>,
    } else {
    }
    %c0 = arith.constant 0 : index
    %c0_1 = arith.constant 0 : index
    %c0_2 = arith.constant 0 : index
    %3 = vector.load %arg3[%c0, %c0_1, %c0_2] : memref<2x8x32xf32, #tpu.memory_space<vmem>>, vector<2x8x32xf32>
    %c0_3 = arith.constant 0 : index
    %c0_4 = arith.constant 0 : index
    %4 = vector.load %arg4[%c0_3, %c0_4] : memref<2x8xf32, #tpu.memory_space<vmem>>, vector<2x8xf32>
    %c0_5 = arith.constant 0 : index
    %c0_6 = arith.constant 0 : index
    %5 = vector.load %arg7[%c0_5, %c0_6] : memref<2x32xf32, #tpu.memory_space<vmem>>, vector<2x32xf32>
    %6 = vector.shape_cast %4 : vector<2x8xf32> to vector<2x8x1xf32>
    %7 = vector.broadcast %6 : vector<2x8x1xf32> to vector<2x8x32xf32>
    %8 = arith.mulf %3, %7 : vector<2x8x32xf32>
    %cst = arith.constant dense<0.000000e+00> : vector<2x32xf32>
    %9 = vector.multi_reduction <add>, %8, %cst [1] : vector<2x8x32xf32> to vector<2x32xf32>
    %10 = arith.addf %5, %9 : vector<2x32xf32>
    %c0_7 = arith.constant 0 : index
    %c0_8 = arith.constant 0 : index
    %11 = vector.load %arg7[%c0_7, %c0_8] : memref<2x32xf32, #tpu.memory_space<vmem>>, vector<2x32xf32>
    tpu.vector_store %arg7[%c0_7, %c0_8], %10 {strides = array<i32>} : memref<2x32xf32, #tpu.memory_space<vmem>>, vector<2x32xf32>,
    %c0_i32_9 = arith.constant 0 : i32
    %12 = arith.cmpi eq, %arg2, %c0_i32_9 : i32
    %13 = arith.extui %12 : i1 to i32
    %c0_i32_10 = arith.constant 0 : i32
    %14 = arith.cmpi ne, %13, %c0_i32_10 : i32
    scf.if %14 {
      %c0_11 = arith.constant 0 : index
      %c0_12 = arith.constant 0 : index
      %15 = vector.load %arg7[%c0_11, %c0_12] : memref<2x32xf32, #tpu.memory_space<vmem>>, vector<2x32xf32>
      %c0_13 = arith.constant 0 : index
      %c0_14 = arith.constant 0 : index
      %16 = vector.load %arg5[%c0_13, %c0_14] : memref<32x1xf32, #tpu.memory_space<vmem>>, vector<32x1xf32>
      %cst_15 = arith.constant dense<0.000000e+00> : vector<2x1xf32>
      %17 = tpu.matmul %15, %16, %cst_15 {dimension_numbers = #tpu.dot_dimension_numbers<[1], [0], [0], [1], [0, 0, 1, 1], [], []>} : vector<2x32xf32>, vector<32x1xf32>, vector<2x1xf32> -> vector<2x1xf32>
      %c0_16 = arith.constant 0 : index
      %c0_17 = arith.constant 0 : index
      %c0_18 = arith.constant 0 : index
      %18 = vector.load %arg6[%c0_16, %c0_17, %c0_18] : memref<1x2x1xf32, #tpu.memory_space<vmem>>, vector<1x2x1xf32>
      %19 = vector.shape_cast %18 : vector<1x2x1xf32> to vector<2x1xf32>
      %20 = vector.shape_cast %17 : vector<2x1xf32> to vector<1x2x1xf32>
      tpu.vector_store %arg6[%c0_16, %c0_17, %c0_18], %20 {strides = array<i32>} : memref<1x2x1xf32, #tpu.memory_space<vmem>>, vector<1x2x1xf32>,
    } else {
    }
    return
  }
  func.func @transform_0(%arg0: i32, %arg1: i32, %arg2: i32) -> (i32, i32, i32) {
    %c1_i32 = arith.constant 1 : i32
    %0 = arith.muli %arg0, %c1_i32 : i32
    %1 = arith.addi %0, %arg2 : i32
    %c0_i32 = arith.constant 0 : i32
    %c0_i32_0 = arith.constant 0 : i32
    return %arg1, %1, %c0_i32 : i32, i32, i32
  }
  func.func @transform_1(%arg0: i32, %arg1: i32, %arg2: i32) -> (i32, i32) {
    %c1_i32 = arith.constant 1 : i32
    %0 = arith.muli %arg0, %c1_i32 : i32
    %1 = arith.addi %0, %arg2 : i32
    %c0_i32 = arith.constant 0 : i32
    return %arg1, %1 : i32, i32
  }
  func.func @transform_2(%arg0: i32, %arg1: i32, %arg2: i32) -> (i32, i32) {
    %c0_i32 = arith.constant 0 : i32
    %c0_i32_0 = arith.constant 0 : i32
    %c0_i32_1 = arith.constant 0 : i32
    return %c0_i32, %c0_i32_0 : i32, i32
  }
  func.func @transform_3(%arg0: i32, %arg1: i32, %arg2: i32) -> (i32, i32, i32) {
    %c0_i32 = arith.constant 0 : i32
    %c0_i32_0 = arith.constant 0 : i32
    return %arg0, %arg1, %c0_i32 : i32, i32, i32
  }
}

</mosaic_0001>

<bundles_post_ra>
// kernel: tpu_custom_call.1
= control target key start
LH: loop header
LB: loop body
LE: loop exit
PB: predicated region body
PF: predicated region fallthrough
CT: control target
= control target key end

     0   :  { %v58_v0 = vlaneseq  ;;  %vm52_vm0 = vcmask 254976   ;;  %v215_v6 = vmov 0.0   ;;  %vm216_vm1 = vmmov 0   ;;  %s266_s1 = inlined_call_operand.vmem [shape: f32[2,8], index: 1, kind: input, shape index: {}]   ;;  %s267_s2 = inlined_call_operand.vmem [shape: f32[32,1], index: 2, kind: input, shape index: {}]   ;;  %s268_s0 = inlined_call_operand.vmem [shape: f32[2,8,32], index: 0, kind: input, shape index: {}]   ;;  %s269_s3 = inlined_call_operand.vmem [shape: f32[1,2,1], index: 3, kind: output, shape index: {}]  }
   0x1   :  { %v56_v2 = vld [vmem:[%s266_s1] sm:$0x3]  ;;  %53 = vst.msk [vmem:[#allocation2] sm:$0x3] %vm52_vm0, %v215_v6  ;;  %202 = vmatprep.subr.mxu0 %v215_v6  ;;  %v104_v8 = vld [vmem:[%s267_s2 + $0x18] sm:$0xff]  ;;  %v103_v9 = vld [vmem:[%s267_s2 + $0x10] sm:$0xff]  ;;  %210 = vmatprep.mubr.msk.f32.mxu0 %vm216_vm1, %v215_v6 }
   0x2   :  { %v59_v1 = vshrl.u32 %v58_v0, 7  ;;  %203 = vmatpush3.msra.mxu0 %v104_v8  ;;  %v102_v10 = vld [vmem:[%s267_s2 + $0x8] sm:$0xff]  ;;  %v101_v11 = vld [vmem:[%s267_s2] sm:$0xff]  ;;  %vm74_vm2 = vcmask 261120   ;;  %vm91_vm3 = vcmask 1041409   ;;  %vm178_vm4 = vcmask 1024  }
   0x3   :  { %204 = vmatprep.subr.mxu0 %v215_v6  ;;  %v54_v12 = vld [vmem:[%s268_s0] sm:$0xff]  ;;  %v55_v15 = vld [vmem:[%s268_s0 + $0x8] sm:$0xff] }
   0x4   :  { %v60_v3 = vsub.s32 0, %v59_v1  ;;  %v67_v4 = vsub.s32 1, %v59_v1  ;;  %205 = vmatpush3.msra.mxu0 %v103_v9 }
   0x5   :  { %206 = vmatprep.subr.mxu0 %v215_v6 }
   0x6   :  { %v61_v5 = vrot.slane %v56_v2, %v60_v3  ;;  %v68_v7 = vrot.slane %v56_v2, %v67_v4  ;;  %207 = vmatpush3.msra.mxu0 %v102_v10 }
   0x7   :  { %208 = vmatprep.subr.mxu0 %v215_v6 }
   0x8   :  { %63 = vbcast.lane.b32.xlu0 %v61_v5, 256  ;;  %209 = vmatpush3.msra.mxu0 %v101_v11  ;;  %v57_v32 = vld [vmem:[#allocation2] sm:$0x3] }
   0xc   :  { %70 = vbcast.lane.b32.xlu0 %v68_v7, 256 }
  0x7a   :  { %v64_v13 = vpop.permute.xlu0 %63 }
  0x7b   :  { %v72_v14 = vmul.f32 %v64_v13, %v54_v12 }
  0x7d   :  { %v75_v16 = vsel %vm74_vm2, %v72_v14, 0.0 }
  0x7e   :  { %v76_v17 = vrot.slane %v75_v16, 4  ;;  %v71_v18 = vpop.permute.xlu0 %70 }
  0x7f   :  { %v73_v19 = vmul.f32 %v71_v18, %v55_v15 }
  0x80   :  { %v77_v20 = vadd.f32 %v76_v17, %v75_v16 }
  0x81   :  { %v82_v21 = vsel %vm74_vm2, %v73_v19, 0.0 }
  0x82   :  { %v78_v22 = vrot.slane %v77_v20, 2  ;;  %v83_v23 = vrot.slane %v82_v21, 4 }
  0x84   :  { %v79_v24 = vadd.f32 %v78_v22, %v77_v20  ;;  %v84_v25 = vadd.f32 %v83_v23, %v82_v21 }
  0x86   :  { %v85_v26 = vrot.slane %v84_v25, 2  ;;  %v80_v27 = vrot.slane %v79_v24, 1 }
  0x88   :  { %v86_v28 = vadd.f32 %v85_v26, %v84_v25  ;;  %v81_v30 = vadd.f32 %v80_v27, %v79_v24 }
  0x8a   :  { %v87_v29 = vrot.slane %v86_v28, 1 }
  0x8c   :  { %v88_v31 = vadd.f32 %v87_v29, %v86_v28 }
  0x8e   :  { %v92_v33 = vsel %vm91_vm3, %v88_v31, %v81_v30 }
  0x8f   :  { %v94_v34 = vadd.f32 %v92_v33, %v57_v32 }
  0x91   :  { %96 = vst.msk [vmem:[#allocation2] sm:$0x3] %vm52_vm0, %v94_v34 }
  0x98   :  { %v100_v35 = vld [vmem:[#allocation2] sm:$0x3] }
  0x99   :  { %211 = vmatmul.mubr.msk.f32.vlgmr.msra.gmra.mxu0 %vm74_vm2, %v100_v35 }
 0x159   :  { %v174_v36 = vpop.f32.mrf.mxu0 }
 0x15a   :  { %179 = vst.msk [vmem:[%s269_s3] sm:$0x3] %vm178_vm4, %v174_v36 }
 0x15b   :  { %v212_v37 = vpop.f32.mrf.mxu0 }

</bundles_post_ra>
